<compile_context>
chip_gen: v7x
topology: tpu7x:2x2x1
jax: 0.10.0
libtpu: 0.0.40
codegen_flags: <defaults>
</compile_context>

<pallas_src>
import jax
import jax.numpy as jnp
from jax.experimental import pallas as pl
from jax.experimental.pallas import tpu as pltpu


def _lin_self_attn_kernel(states_ref, w1t_ref, b1_ref, w2_ref, b2_ref,
                          m_ref, a_ref):
    # states_ref: (TB, S, D) bf16   w1t_ref: (D, H) bf16   b1_ref: (1, H) f32
    # w2_ref:     (R, H) bf16       b2_ref:  (R, 1) f32
    # m_ref:      (TB, R, D) f32    a_ref:   (TB, R, S) f32 (A transposed)
    TB, S, D = states_ref.shape
    H = w1t_ref.shape[1]
    R = w2_ref.shape[0]

    x = states_ref[...]                                    # (TB, S, D) bf16
    # Flatten batch*seq so the MXU sees TB*S rows for the hidden projection
    # (S is kept whole per batch, so this reshape is a pure relabel).
    x2 = x.reshape(TB * S, D)

    # Hidden projection + tanh (bf16 MXU matmul, f32 accumulate, f32 tanh/EUP).
    h = jnp.tanh(
        jnp.dot(x2, w1t_ref[...], preferred_element_type=jnp.float32)
        + b1_ref[...])                                     # (TB*S, H) f32
    h3 = h.astype(jnp.bfloat16).reshape(TB, S, H)          # (TB, S, H) bf16

    # Attention scores, produced directly in the transposed (TB, R, S) layout
    # (sequence on the lane axis) via a contract-last-dims batched matmul --
    # no explicit transpose/relayout anywhere on this path.
    w2b = jnp.broadcast_to(w2_ref[...], (TB, R, H))        # bf16, hoisted once
    scores_t = (jnp.einsum('brh,bsh->brs', w2b, h3,
                           preferred_element_type=jnp.float32)
                + b2_ref[...])                             # (TB, R, S) f32

    # Softmax over the sequence axis (== torch softmax dim=1), now a
    # lane-axis reduction. EUP approximate reciprocal keeps the divide off
    # the VALU; rows sum to 1 only to ~1e-3 (flag if a downstream loss is
    # normalization-sensitive).
    s_max = jnp.max(scores_t, axis=-1, keepdims=True)      # (TB, R, 1)
    e = jnp.exp(scores_t - s_max)                          # (TB, R, S)
    denom = jnp.sum(e, axis=-1, keepdims=True)             # (TB, R, 1)
    attn_t = e * pl.reciprocal(denom, approx=True)         # (TB, R, S) f32

    a_ref[...] = attn_t.astype(a_ref.dtype)

    # M[b] = A[b]^T @ X[b]: one batched bf16 matmul contracting S, f32 acc.
    m3 = jnp.einsum('brs,bsd->brd',
                    attn_t.astype(jnp.bfloat16), x,
                    preferred_element_type=jnp.float32)    # (TB, R, D) f32
    m_ref[...] = m3.astype(m_ref.dtype)


def _vmem_limits():
    """Scoped VMEM limit + per-step budget, derived from the actual chip."""
    cap = 64 * 1024 * 1024                     # conservative default (v7x physical)
    try:
        info = pltpu.get_tpu_info()
        cap = int(getattr(info, "vmem_capacity_bytes", cap) or cap)
    except Exception:
        pass
    # 64 MiB scoped on 128-MiB-VMEM chips (v5e/v6e), 32 MiB on v7x.
    scoped = max(32 * 1024 * 1024, min(cap // 2, 64 * 1024 * 1024))
    budget = (scoped * 3) // 4                 # headroom for compiler scratch
    return scoped, budget


def _pick_batch_tile(B, S, D, H, R, *, vmem_budget_bytes,
                     row_target=512, min_rows_for_split=128, max_tb=512):
    """Pick the batch tile TB for the grid.

    VMEM accounting covers the double-buffered states/M/A blocks, the
    (double-buffered) weight/bias blocks, and the in-kernel intermediates
    (h in f32+bf16, broadcast W2, scores/exp/attn, M accumulator).
    Preference order:
      1. smallest TB reaching `row_target` MXU rows/step with >= 2 grid steps
         (big tiles for HBM roofline, but both v7x TensorCores stay fed);
      2. largest TB that still leaves >= 2 steps of >= `min_rows_for_split`
         rows each;
      3. the fattest feasible tile (toy sizes collapse to one grid step).
    """
    def step_bytes(tb):
        rows = tb * S
        weights = 2 * (D * H * 2 + R * H * 2 + H * 4 + R * 4)
        io = 2 * (tb * S * D * 2       # bf16 states block
                  + tb * R * D * 4     # f32 M block
                  + tb * R * S * 4)    # f32 A block
        inter = (rows * H * 4 + rows * H * 2   # h f32 + bf16 copy
                 + tb * R * H * 2              # broadcast W2
                 + 3 * tb * R * S * 4          # scores / exp / attn (f32)
                 + tb * R * S * 2              # attn bf16
                 + tb * R * D * 4)             # M accumulator
        return weights + io + inter

    cands = [tb for tb in range(1, min(B, max_tb) + 1)
             if B % tb == 0 and step_bytes(tb) <= vmem_budget_bytes]
    if not cands:
        return 1
    full = [t for t in cands if t * S >= row_target and (B // t) >= 2]
    if full:
        return min(full)
    split = [t for t in cands if t * S >= min_rows_for_split and (B // t) >= 2]
    if split:
        return max(split)
    return max(cands)


def lin_self_attention(states_sbd, w1, b1, w2, b2, a_dtype=jnp.float32):
    """
    states_sbd: (seq_len, batch, input_size)   -- PyTorch layout
    w1: (hidden, input)   b1: (hidden,)        -- torch.nn.Linear weight/bias
    w2: (r, hidden)       b2: (r,)
    a_dtype: dtype of the returned attention map (bf16 halves the largest
             HBM writeback if downstream tolerates it).
    Returns: (M, A) with M: (batch, r*input_size), A: (batch, seq_len, r)
    """
    S, B, D = states_sbd.shape
    H = w1.shape[0]
    R = w2.shape[0]

    # Glue: (seq, batch, input) -> (batch, seq, input); bf16 matmul operands,
    # f32 biases (added after the f32-accumulated matmuls).
    states = jnp.transpose(states_sbd, (1, 0, 2)).astype(jnp.bfloat16)  # (B,S,D)
    w1t = jnp.asarray(w1, jnp.bfloat16).T                               # (D,H)
    w2b = jnp.asarray(w2, jnp.bfloat16)                                 # (R,H)
    b1r = jnp.asarray(b1, jnp.float32).reshape(1, H)
    b2r = jnp.asarray(b2, jnp.float32).reshape(R, 1)

    scoped_vmem, budget = _vmem_limits()
    TB = _pick_batch_tile(B, S, D, H, R, vmem_budget_bytes=budget)
    grid = (B // TB,)

    grid_spec = pltpu.PrefetchScalarGridSpec(
        num_scalar_prefetch=0,
        grid=grid,
        in_specs=[
            # TODO(synk): if profiling on v5e shows exposed DMA on this block,
            # add pipeline_mode=pl.Buffered(3) here.
            pl.BlockSpec((TB, S, D), lambda i: (i, 0, 0)),
            pl.BlockSpec((D, H), lambda i: (0, 0)),   # weights stay VMEM-resident
            pl.BlockSpec((1, H), lambda i: (0, 0)),
            pl.BlockSpec((R, H), lambda i: (0, 0)),
            pl.BlockSpec((R, 1), lambda i: (0, 0)),
        ],
        out_specs=[
            pl.BlockSpec((TB, R, D), lambda i: (i, 0, 0)),   # M as (B, R, D)
            pl.BlockSpec((TB, R, S), lambda i: (i, 0, 0)),   # A transposed (B, R, S)
        ],
    )

    m3, a_t = pl.pallas_call(
        _lin_self_attn_kernel,
        out_shape=(
            jax.ShapeDtypeStruct((B, R, D), jnp.float32),
            jax.ShapeDtypeStruct((B, R, S), a_dtype),
        ),
        grid_spec=grid_spec,
        compiler_params=pltpu.CompilerParams(
            dimension_semantics=("parallel",),
            vmem_limit_bytes=scoped_vmem),
    )(states, w1t, b1r, w2b, b2r)

    # Layout glue (metadata reshape + one transpose of A back to the module's
    # (B, S, R) contract; consumers that accept (B, R, S) can skip it).
    m = m3.reshape(B, R * D)
    a = jnp.transpose(a_t, (0, 2, 1))
    return m, a


def _reference(states_sbd, w1, b1, w2, b2):
    # Pure-JAX f32 reference mirroring the PyTorch forward.
    states = jnp.transpose(states_sbd, (1, 0, 2)).astype(jnp.float32)   # (B,S,D)
    h = jnp.tanh(jnp.einsum("bsd,hd->bsh", states, w1) + b1)
    scores = jnp.einsum("bsh,rh->bsr", h, w2) + b2
    a = jax.nn.softmax(scores, axis=1)
    m = jnp.einsum("bsr,bsd->brd", a, states)
    return m.reshape(states.shape[0], -1), a


if __name__ == "__main__":
    # Small shapes consistent with the module: seq=8, batch=2, input=32,
    # hidden=32 (hidden_size=-1 => hidden=input), r=4.
    S, B, D, H, R = 8, 2, 32, 32, 4

    key = jax.random.PRNGKey(0)
    k_x, k_w1, k_b1, k_w2, k_b2 = jax.random.split(key, 5)

    states = jax.random.normal(k_x, (S, B, D), dtype=jnp.float32)
    # Deterministic init mimicking torch.nn.Linear's U(-1/sqrt(fan_in), 1/sqrt(fan_in))
    w1 = jax.random.uniform(k_w1, (H, D), jnp.float32, -1.0, 1.0) / jnp.sqrt(D)
    b1 = jax.random.uniform(k_b1, (H,), jnp.float32, -1.0, 1.0) / jnp.sqrt(D)
    w2 = jax.random.uniform(k_w2, (R, H), jnp.float32, -1.0, 1.0) / jnp.sqrt(H)
    b2 = jax.random.uniform(k_b2, (R,), jnp.float32, -1.0, 1.0) / jnp.sqrt(H)

    m_out, a_out = lin_self_attention(states, w1, b1, w2, b2)
    jax.block_until_ready((m_out, a_out))

    m_exp, a_exp = _reference(states, w1, b1, w2, b2)
    assert m_out.shape == (B, R * D)
    assert a_out.shape == (B, S, R)
    # bf16 MXU operands + EUP approx reciprocal loosen agreement vs the f32
    # reference (expected ~1e-3..1e-2), hence the relaxed tolerances.
    assert jnp.allclose(a_out, a_exp, atol=2e-2, rtol=2e-2), \
        float(jnp.max(jnp.abs(a_out - a_exp)))
    assert jnp.allclose(m_out, m_exp, atol=5e-2, rtol=5e-2), \
        float(jnp.max(jnp.abs(m_out - m_exp)))

    print("KERNEL_OK")
</pallas_src>

<mosaic_0001>
module attributes {stable_mosaic.version = 11 : i64} {
  func.func @_lin_self_attn_kernel(%arg0: i32, %arg1: memref<2x8x32xbf16, #tpu.memory_space<vmem>>, %arg2: memref<32x32xbf16, #tpu.memory_space<vmem>>, %arg3: memref<1x32xf32, #tpu.memory_space<vmem>>, %arg4: memref<4x32xbf16, #tpu.memory_space<vmem>>, %arg5: memref<4x1xf32, #tpu.memory_space<vmem>>, %arg6: memref<2x4x32xf32, #tpu.memory_space<vmem>>, %arg7: memref<2x4x8xf32, #tpu.memory_space<vmem>>) attributes {dimension_semantics = [#tpu.dimension_semantics<parallel>], iteration_bounds = array<i64: 1>, scalar_prefetch = 0 : i64, scratch_operands = 0 : i64, tpu.core_type = #tpu.core_type<tc>, window_params = [{transform_indices = @transform_0, window_bounds = array<i64: 2, 8, 32>}, {pipeline_mode = #tpu.pipeline_mode<synchronous>, transform_indices = @transform_1, window_bounds = array<i64: 32, 32>}, {pipeline_mode = #tpu.pipeline_mode<synchronous>, transform_indices = @transform_2, window_bounds = array<i64: 1, 32>}, {pipeline_mode = #tpu.pipeline_mode<synchronous>, transform_indices = @transform_3, window_bounds = array<i64: 4, 32>}, {pipeline_mode = #tpu.pipeline_mode<synchronous>, transform_indices = @transform_4, window_bounds = array<i64: 4, 1>}, {transform_indices = @transform_5, window_bounds = array<i64: 2, 4, 32>}, {transform_indices = @transform_6, window_bounds = array<i64: 2, 4, 8>}]} {
    %c0 = arith.constant 0 : index
    %c0_0 = arith.constant 0 : index
    %c0_1 = arith.constant 0 : index
    %0 = vector.load %arg1[%c0, %c0_0, %c0_1] : memref<2x8x32xbf16, #tpu.memory_space<vmem>>, vector<2x8x32xbf16>
    %1 = vector.shape_cast %0 : vector<2x8x32xbf16> to vector<16x32xbf16>
    %c0_2 = arith.constant 0 : index
    %c0_3 = arith.constant 0 : index
    %2 = vector.load %arg2[%c0_2, %c0_3] : memref<32x32xbf16, #tpu.memory_space<vmem>>, vector<32x32xbf16>
    %cst = arith.constant dense<0.000000e+00> : vector<16x32xf32>
    %3 = tpu.matmul %1, %2, %cst {dimension_numbers = #tpu.dot_dimension_numbers<[1], [0], [0], [1], [0, 0, 1, 1], [], []>} : vector<16x32xbf16>, vector<32x32xbf16>, vector<16x32xf32> -> vector<16x32xf32>
    %c0_4 = arith.constant 0 : index
    %c0_5 = arith.constant 0 : index
    %4 = vector.load %arg3[%c0_4, %c0_5] : memref<1x32xf32, #tpu.memory_space<vmem>>, vector<1x32xf32>
    %5 = vector.broadcast %4 : vector<1x32xf32> to vector<16x32xf32>
    %6 = arith.addf %3, %5 : vector<16x32xf32>
    %7 = math.tanh %6 : vector<16x32xf32>
    %8 = arith.truncf %7 : vector<16x32xf32> to vector<16x32xbf16>
    %9 = vector.shape_cast %8 : vector<16x32xbf16> to vector<2x8x32xbf16>
    %c0_6 = arith.constant 0 : index
    %c0_7 = arith.constant 0 : index
    %10 = vector.load %arg4[%c0_6, %c0_7] : memref<4x32xbf16, #tpu.memory_space<vmem>>, vector<4x32xbf16>
    %11 = vector.shape_cast %10 : vector<4x32xbf16> to vector<1x4x32xbf16>
    %12 = vector.broadcast %11 : vector<1x4x32xbf16> to vector<2x4x32xbf16>
    "tpu.trace_start"() <{level = 10 : i32, message = "brh,bsh->brs"}> : () -> ()
    %cst_8 = arith.constant dense<0.000000e+00> : vector<2x4x8xf32>
    %13 = tpu.matmul %12, %9, %cst_8 {dimension_numbers = #tpu.dot_dimension_numbers<[2], [2], [1], [1], [0, 0, 0, 1, 1, 1], [0], [0]>} : vector<2x4x32xbf16>, vector<2x8x32xbf16>, vector<2x4x8xf32> -> vector<2x4x8xf32>
    "tpu.trace_stop"() : () -> ()
    %c0_9 = arith.constant 0 : index
    %c0_10 = arith.constant 0 : index
    %14 = vector.load %arg5[%c0_9, %c0_10] : memref<4x1xf32, #tpu.memory_space<vmem>>, vector<4x1xf32>
    %15 = vector.shape_cast %14 : vector<4x1xf32> to vector<1x4x1xf32>
    %16 = vector.broadcast %15 : vector<1x4x1xf32> to vector<2x4x8xf32>
    %17 = arith.addf %13, %16 : vector<2x4x8xf32>
    %cst_11 = arith.constant dense<0xFF800000> : vector<2x4xf32>
    %18 = vector.multi_reduction <maximumf>, %17, %cst_11 [2] : vector<2x4x8xf32> to vector<2x4xf32>
    %19 = vector.shape_cast %18 : vector<2x4xf32> to vector<2x4x1xf32>
    %20 = vector.broadcast %19 : vector<2x4x1xf32> to vector<2x4x8xf32>
    %21 = arith.subf %17, %20 : vector<2x4x8xf32>
    %22 = math.exp %21 : vector<2x4x8xf32>
    %cst_12 = arith.constant dense<0.000000e+00> : vector<2x4xf32>
    %23 = vector.multi_reduction <add>, %22, %cst_12 [2] : vector<2x4x8xf32> to vector<2x4xf32>
    %24 = vector.shape_cast %23 : vector<2x4xf32> to vector<2x4x1xf32>
    %25 = tpu.reciprocal %24 {approx = true} : vector<2x4x1xf32> -> vector<2x4x1xf32>
    %26 = vector.broadcast %25 : vector<2x4x1xf32> to vector<2x4x8xf32>
    %27 = arith.mulf %22, %26 : vector<2x4x8xf32>
    %c0_13 = arith.constant 0 : index
    %c0_14 = arith.constant 0 : index
    %c0_15 = arith.constant 0 : index
    %28 = vector.load %arg7[%c0_13, %c0_14, %c0_15] : memref<2x4x8xf32, #tpu.memory_space<vmem>>, vector<2x4x8xf32>
    tpu.vector_store %arg7[%c0_13, %c0_14, %c0_15], %27 {strides = array<i32>} : memref<2x4x8xf32, #tpu.memory_space<vmem>>, vector<2x4x8xf32>,
    %29 = arith.truncf %27 : vector<2x4x8xf32> to vector<2x4x8xbf16>
    "tpu.trace_start"() <{level = 10 : i32, message = "brs,bsd->brd"}> : () -> ()
    %cst_16 = arith.constant dense<0.000000e+00> : vector<2x4x32xf32>
    %30 = tpu.matmul %29, %0, %cst_16 {dimension_numbers = #tpu.dot_dimension_numbers<[2], [1], [1], [2], [0, 0, 0, 1, 1, 2], [0], [0]>} : vector<2x4x8xbf16>, vector<2x8x32xbf16>, vector<2x4x32xf32> -> vector<2x4x32xf32>
    "tpu.trace_stop"() : () -> ()
    %c0_17 = arith.constant 0 : index
    %c0_18 = arith.constant 0 : index
    %c0_19 = arith.constant 0 : index
    %31 = vector.load %arg6[%c0_17, %c0_18, %c0_19] : memref<2x4x32xf32, #tpu.memory_space<vmem>>, vector<2x4x32xf32>
    tpu.vector_store %arg6[%c0_17, %c0_18, %c0_19], %30 {strides = array<i32>} : memref<2x4x32xf32, #tpu.memory_space<vmem>>, vector<2x4x32xf32>,
    return
  }
  func.func @transform_0(%arg0: i32) -> (i32, i32, i32) {
    %c0_i32 = arith.constant 0 : i32
    %c0_i32_0 = arith.constant 0 : i32
    %c0_i32_1 = arith.constant 0 : i32
    return %arg0, %c0_i32, %c0_i32_0 : i32, i32, i32
  }
  func.func @transform_1(%arg0: i32) -> (i32, i32) {
    %c0_i32 = arith.constant 0 : i32
    %c0_i32_0 = arith.constant 0 : i32
    %c0_i32_1 = arith.constant 0 : i32
    return %c0_i32, %c0_i32_0 : i32, i32
  }
  func.func @transform_2(%arg0: i32) -> (i32, i32) {
    %c0_i32 = arith.constant 0 : i32
    %c0_i32_0 = arith.constant 0 : i32
    %c0_i32_1 = arith.constant 0 : i32
    return %c0_i32, %c0_i32_0 : i32, i32
  }
  func.func @transform_3(%arg0: i32) -> (i32, i32) {
    %c0_i32 = arith.constant 0 : i32
    %c0_i32_0 = arith.constant 0 : i32
    %c0_i32_1 = arith.constant 0 : i32
    return %c0_i32, %c0_i32_0 : i32, i32
  }
  func.func @transform_4(%arg0: i32) -> (i32, i32) {
    %c0_i32 = arith.constant 0 : i32
    %c0_i32_0 = arith.constant 0 : i32
    %c0_i32_1 = arith.constant 0 : i32
    return %c0_i32, %c0_i32_0 : i32, i32
  }
  func.func @transform_5(%arg0: i32) -> (i32, i32, i32) {
    %c0_i32 = arith.constant 0 : i32
    %c0_i32_0 = arith.constant 0 : i32
    %c0_i32_1 = arith.constant 0 : i32
    return %arg0, %c0_i32, %c0_i32_0 : i32, i32, i32
  }
  func.func @transform_6(%arg0: i32) -> (i32, i32, i32) {
    %c0_i32 = arith.constant 0 : i32
    %c0_i32_0 = arith.constant 0 : i32
    %c0_i32_1 = arith.constant 0 : i32
    return %arg0, %c0_i32, %c0_i32_0 : i32, i32, i32
  }
}

</mosaic_0001>

<bundles_post_ra>
// kernel: tpu_custom_call.1
= control target key start
LH: loop header
LB: loop body
LE: loop exit
PB: predicated region body
PF: predicated region fallthrough
CT: control target
= control target key end

     0   :  { %12 = vsyncpa [#allocation3], 0  ;;  %s704_s0 = inlined_call_operand.hbm [shape: bf16[2,8,32], index: 0, kind: input, shape index: {}]   ;;  %s705_s1 = inlined_call_operand.hbm [shape: bf16[32,32], index: 1, kind: input, shape index: {}]   ;;  %s706_s2 = inlined_call_operand.vmem [shape: f32[1,32], index: 2, kind: input, shape index: {}]   ;;  %s707_s3 = inlined_call_operand.vmem [shape: bf16[4,32], index: 3, kind: input, shape index: {}]   ;;  %s708_s4 = inlined_call_operand.vmem [shape: f32[4,1], index: 4, kind: input, shape index: {}]   ;;  %s709_s5 = inlined_call_operand.hbm [shape: f32[2,4,32], index: 5, kind: output, shape index: {0}]   ;;  %s710_s6 = inlined_call_operand.hbm [shape: f32[2,4,8], index: 6, kind: output, shape index: {1}]  }
   0x1   :  { %13 = vsyncpa [#allocation6], 0 }
   0x2   :  { %14 = vsyncpa [#allocation4], 0 }
   0x3   :  { %15 = vsyncpa [#allocation9], 0  ;;  %s567_s21 = smov [#allocation2]   ;;  %s471_s25 = scalar_lea.hbm %s704_s0, 128 }
   0x4   :  { %s21_s22 = sshll.u32 %s567_s21, 4  ;;  %p472_p0 = scmp.ne.s32.totalorder %s704_s0, %s471_s25  ;;  %s22_s22 = int_to_ptr.vmem [resolvable:$true] %s21_s22 }
   0x5   :  { %p475_p1 = scmp.lt.u32.totalorder %s471_s25, %s704_s0 }
   0x7   :  { %p477_p2 = pnand %p475_p1, %p472_p0 }
   0x9   :  { %480 = shalt.err (!%p477_p2)
}
   0xa   :  { %s481_s30 = scalar_lea.vmem %s22_s22, 128  ;;  %p486_p4 = scmp.lt.s32.totalorder %s22_s22, %s22_s22 }
   0xb   :  { %p482_p3 = scmp.ne.s32.totalorder %s22_s22, %s481_s30  ;;  %p487_p5 = scmp.lt.s32.totalorder %s481_s30, %s481_s30 }
   0xd   :  { %p488_p6 = por %p487_p5, %p486_p4 }
   0xf   :  { %p489_p7 = pnand %p488_p6, %p482_p3 }
  0x11   :  { %492 = shalt.err (!%p489_p7)
}
  0x12   :  { %s568_s7 = smov 64   ;;  %s569_s8 = smov 4  }
  0x13   :  { %27 = dma.hbm_to_vmem [thread:$0]  %s704_s0, 128, %s22_s22, [#allocation3], %s568_s7, %s568_s7, %s569_s8  }
  0x14   :  { %s570_s11 = smov [#allocation5]   ;;  %s493_s15 = scalar_lea.hbm %s705_s1, 256 }
  0x15   :  { %s33_s12 = sshll.u32 %s570_s11, 4  ;;  %p494_p8 = scmp.ne.s32.totalorder %s705_s1, %s493_s15  ;;  %s34_s12 = int_to_ptr.vmem [resolvable:$true] %s33_s12 }
  0x16   :  { %p497_p9 = scmp.lt.u32.totalorder %s493_s15, %s705_s1 }
  0x18   :  { %p499_p10 = pnand %p497_p9, %p494_p8 }
  0x1a   :  { %502 = shalt.err (!%p499_p10)
}
  0x1b   :  { %s503_s20 = scalar_lea.vmem %s34_s12, 256  ;;  %p508_p12 = scmp.lt.s32.totalorder %s34_s12, %s34_s12 }
  0x1c   :  { %p504_p11 = scmp.ne.s32.totalorder %s34_s12, %s503_s20  ;;  %p509_p13 = scmp.lt.s32.totalorder %s503_s20, %s503_s20 }
  0x1e   :  { %p510_p0 = por %p509_p13, %p508_p12 }
  0x20   :  { %p511_p1 = pnand %p510_p0, %p504_p11 }
  0x22   :  { %514 = shalt.err (!%p511_p1)
}
  0x23   :  { %39 = dma.hbm_to_vmem [thread:$0]  %s705_s1, 256, %s34_s12, [#allocation6], %s568_s7, %s568_s7, %s569_s8  }
  0x24   :  { %559 = dma.done.wait [#allocation3], 128  }
  0x25   :  { %560 = vsyncadd [#allocation3], 4294967168 }
  0x26   :  { %561 = dma.done.wait [#allocation6], 256  }
  0x27   :  { %562 = vsyncadd [#allocation6], 4294967040  ;;  %v571_v0 = vmov 0.0   ;;  %vm572_vm0 = vmmov 0   ;;  %v456_v1 = vld [vmem:[#allocation5] sm:$0xff]   ;;  %v457_v2 = vld [vmem:[#allocation5 + $0x8] sm:$0xff]  }
  0x28   :  { %414 = vmatprep.subr.bf16.mxu0 %v571_v0  ;;  %418 = vmatprep.mubr.msk.bf16.mxu0 %vm572_vm0, %v571_v0  ;;  %v643_v3 = vld [vmem:[#allocation2] sm:$0xf]  ;;  %v645_v4 = vld [vmem:[#allocation2 + $0x4] sm:$0xf]  ;;  %vm83_vm1 = vcmask 261120   ;;  %v573_v7 = vmov 0  }
  0x29   :  { %422 = vmatprep.subr.bf16.mxu1 %v571_v0  ;;  %424 = vmatprep.mubr.msk.bf16.mxu1 %vm572_vm0, %v571_v0  ;;  %v391_v5 = vcombine.low %v643_v3, %v645_v4  ;;  %v137_v6 = vld [vmem:[%s708_s4] sm:$0xf]  ;;  %vm232_vm2 = vcmask 60416   ;;  %vm263_vm3 = vcmask 1043456   ;;  %vm259_vm4 = vcmask 64512  }
  0x2a   :  { %415 = vmatpush3.bf16.msra.mxu0 %v456_v1  ;;  %455 = vset.pattern.permute.xlu0 %v573_v7  ;;  %v390_v8 = vld [vmem:[%s706_s2] ss:$0 sm:$0xff]  ;;  %v265_v45 = vsel %vm263_vm3, %v643_v3, 0  ;;  %v311_v46 = vsel %vm263_vm3, %v645_v4, 0 }
  0x2b   :  { %416 = vmatprep.subr.bf16.mxu0 %v571_v0  ;;  %140 = vperm.xlu0 %455, %v137_v6   ;;  %v136_v21 = vld [vmem:[%s707_s3] sm:$0x3]  ;;  %s574_s3 = smov [#allocation8]  }
  0x2c   :  { %s373_s25 = sshll.u32 %s574_s3, 4  ;;  %s374_s25 = int_to_ptr.vmem [resolvable:$true] %s373_s25 }
  0x2d   :  { %s515_s26 = scalar_lea.vmem %s374_s25, 128  ;;  %p520_p3 = scmp.lt.s32.totalorder %s374_s25, %s374_s25 }
  0x2e   :  { %417 = vmatpush3.bf16.msra.mxu0 %v457_v2  ;;  %p516_p2 = scmp.ne.s32.totalorder %s374_s25, %s515_s26  ;;  %p521_p4 = scmp.lt.s32.totalorder %s515_s26, %s515_s26 }
  0x2f   :  { %428 = vmatprep.subr.bf16.mxu0 %v571_v0 }
  0x30   :  { %p522_p5 = por %p521_p4, %p520_p3 }
  0x31   :  { %419 = vmatmul.mubr.msk.bf16.vlgmr.msra.gmra.mrb[0].mxu0 %vm83_vm1, %v391_v5 }
  0x32   :  { %430 = vmatprep.mubr.msk.bf16.mxu0 %vm572_vm0, %v571_v0  ;;  %p523_p6 = pnand %p522_p5, %p516_p2 }
  0xaa   :  { %v141_v22 = vpop.permute.xlu0 %140 }
 0x104   :  { %v121_v9 = vpop.f32.mrb[0].mxu0 }
 0x105   :  { %v122_v10 = vadd.f32 %v390_v8, %v121_v9  ;;  %v420_v11 = vpop.f32.mrb[1].mxu0 }
 0x106   :  { %v124_v12 = vpop.f32.mrb[2].mxu0 }
 0x107   :  { %459 = vtanh.f32 %v122_v10  ;;  %v125_v13 = vadd.f32 %v390_v8, %v124_v12  ;;  %v421_v14 = vpop.f32.mrb[3].mxu0 }
 0x109   :  { %461 = vtanh.f32 %v125_v13 }
 0x111   :  { %v460_v15 = vpop.eup %459 }
 0x112   :  { %v401_v16 = vpack.c.bf16 %v460_v15, %v460_v15 }
 0x113   :  { %v462_v17 = vpop.eup %461 }
 0x114   :  { %v402_v18 = vpack.c.bf16 %v462_v17, %v462_v17  ;;  %v147_v19 = vsel %vm83_vm1, %v401_v16, 0 }
 0x115   :  { %423 = vmatpush3.bf16.xpose.msra.mxu1 %v147_v19 }
 0x116   :  { %v190_v20 = vsel %vm83_vm1, %v402_v18, 0  ;;  %434 = vmatprep.subr.bf16.mxu1 %v571_v0 }
 0x117   :  { %429 = vmatpush3.bf16.xpose.msra.mxu0 %v190_v20 }
 0x118   :  { %440 = vmatprep.subr.bf16.mxu0 %v571_v0 }
 0x11c   :  { %425 = vmatmul.mubr.msk.bf16.vlgmr.msra.gmra.mrb[0].mxu1 %vm83_vm1, %v136_v21 }
 0x11d   :  { %436 = vmatprep.mubr.msk.bf16.mxu1 %vm572_vm0, %v571_v0  ;;  %435 = vmatpush3.bf16.msra.mxu1 %v265_v45 }
 0x11e   :  { %431 = vmatmul.mubr.msk.bf16.vlgmr.msra.gmra.mrb[4].mxu0 %vm83_vm1, %v136_v21 }
 0x11f   :  { %442 = vmatprep.mubr.msk.bf16.mxu0 %vm572_vm0, %v571_v0  ;;  %441 = vmatpush3.bf16.msra.mxu0 %v311_v46 }
 0x1ef   :  { %v183_v23 = vpop.f32.mrb[0].mxu1 }
 0x1f0   :  { %v184_v24 = vadd.f32 %v183_v23, %v141_v22  ;;  %v426_v25 = vpop.f32.mrb[1].mxu1 }
 0x1f1   :  { %v186_v26 = vpop.f32.mrb[2].mxu1  ;;  %v226_v27 = vpop.f32.mrb[4].mxu0 }
 0x1f2   :  { %v227_v28 = vadd.f32 %v226_v27, %v141_v22  ;;  %v427_v29 = vpop.f32.mrb[3].mxu1  ;;  %v432_v30 = vpop.f32.mrb[5].mxu0  ;;  %v233_v31 = vsel %vm232_vm2, %v184_v24, -inf }
 0x1f3   :  { %234 = vmax.xlane.f32.xlu0 %v233_v31  ;;  %v229_v32 = vpop.f32.mrb[6].mxu0 }
 0x1f4   :  { %v433_v33 = vpop.f32.mrb[7].mxu0  ;;  %v236_v34 = vsel %vm232_vm2, %v227_v28, -inf }
 0x1f5   :  { %237 = vmax.xlane.f32.xlu1 %v236_v34 }
 0x280   :  { %v235_v35 = vpop.xlane.xlu0 %234 }
 0x281   :  { %v239_v36 = vsub.f32 %v184_v24, %v235_v35 }
 0x282   :  { %v238_v37 = vpop.xlane.xlu1 %237 }
 0x283   :  { %v241_v38 = vmul.f32 1.442695, %v239_v36  ;;  %v240_v39 = vsub.f32 %v227_v28, %v238_v37 }
 0x285   :  { %463 = vpow2.f32 %v241_v38  ;;  %v243_v40 = vmul.f32 1.442695, %v240_v39 }
 0x287   :  { %465 = vpow2.f32 %v243_v40 }
 0x28f   :  { %v464_v41 = vpop.eup %463 }
 0x290   :  { %v245_v42 = vsel %vm232_vm2, %v464_v41, 0.0 }
 0x291   :  { %v466_v43 = vpop.eup %465  ;;  %246 = vadd.xlane.f32.xlu1 %v245_v42 }
 0x292   :  { %v248_v44 = vsel %vm232_vm2, %v466_v43, 0.0 }
 0x295   :  { %249 = vadd.xlane.f32.xlu1 %v248_v44 }
 0x31e   :  { %v247_v47 = vpop.xlane.xlu1 %246 }
 0x31f   :  { %467 = vrcp.f32 %v247_v47 }
 0x322   :  { %v250_v48 = vpop.xlane.xlu1 %249 }
 0x323   :  { %469 = vrcp.f32 %v250_v48 }
 0x329   :  { %v468_v49 = vpop.eup %467 }
 0x32a   :  { %v253_v50 = vmul.f32 %v468_v49, %v464_v41 }
 0x32c   :  { %255 = vst.msk [vmem:[#allocation8] sm:$0xf] %vm232_vm2, %v253_v50  ;;  %v257_v51 = vpack.c.bf16 %v253_v50, %v253_v50 }
 0x32d   :  { %v470_v52 = vpop.eup %469 }
 0x32e   :  { %v254_v53 = vmul.f32 %v470_v52, %v466_v43  ;;  %437 = vmatmul.mubr.msk.bf16.vlgmr.msra.gmra.mrb[4].mxu1 %vm259_vm4, %v257_v51 }
 0x330   :  { %256 = vst.msk [vmem:[#allocation8 + $0x4] sm:$0xf] %vm232_vm2, %v254_v53  ;;  %v258_v54 = vpack.c.bf16 %v254_v53, %v254_v53 }
 0x332   :  { %443 = vmatmul.mubr.msk.bf16.vlgmr.msra.gmra.mrb[8].mxu0 %vm259_vm4, %v258_v54 }
 0x333   :  { %526 = shalt.err (!%p523_p6)
}
 0x334   :  { %s527_s29 = scalar_lea.hbm %s710_s6, 128 }
 0x335   :  { %p528_p7 = scmp.ne.s32.totalorder %s710_s6, %s527_s29  ;;  %p531_p8 = scmp.lt.u32.totalorder %s527_s29, %s710_s6 }
 0x337   :  { %p533_p9 = pnand %p531_p8, %p528_p7 }
 0x339   :  { %536 = shalt.err (!%p533_p9)
}
 0x33a   :  { %379 = dma.vmem_to_hbm [thread:$0]  %s374_s25, 128, %s710_s6, [#allocation9], %s568_s7, %s568_s7, %s569_s8   ;;  %vm353_vm5 = vcmask 257024  }
 0x33b   :  { %s575_s14 = smov [#allocation7]  }
 0x33c   :  { %s361_s15 = sshll.u32 %s575_s14, 4  ;;  %s362_s15 = int_to_ptr.vmem [resolvable:$true] %s361_s15 }
 0x33d   :  { %s537_s16 = scalar_lea.vmem %s362_s15, 128  ;;  %p542_p11 = scmp.lt.s32.totalorder %s362_s15, %s362_s15 }
 0x33e   :  { %p538_p10 = scmp.ne.s32.totalorder %s362_s15, %s537_s16  ;;  %p543_p12 = scmp.lt.s32.totalorder %s537_s16, %s537_s16 }
 0x340   :  { %p544_p13 = por %p543_p12, %p542_p11 }
 0x342   :  { %p545_p0 = pnand %p544_p13, %p538_p10 }
 0x401   :  { %v301_v55 = vpop.f32.mrb[4].mxu1 }
 0x402   :  { %354 = vst.msk [vmem:[#allocation7] sm:$0xf] %vm353_vm5, %v301_v55  ;;  %v438_v56 = vpop.f32.mrb[5].mxu1 }
 0x403   :  { %v304_v57 = vpop.f32.mrb[6].mxu1 }
 0x404   :  { %v439_v58 = vpop.f32.mrb[7].mxu1 }
 0x405   :  { %v347_v59 = vpop.f32.mrb[8].mxu0 }
 0x406   :  { %355 = vst.msk [vmem:[#allocation7 + $0x4] sm:$0xf] %vm353_vm5, %v347_v59  ;;  %v444_v60 = vpop.f32.mrb[9].mxu0 }
 0x407   :  { %v350_v61 = vpop.f32.mrb[10].mxu0 }
 0x408   :  { %548 = shalt.err (!%p545_p0)
}
 0x409   :  { %s549_s18 = scalar_lea.hbm %s709_s5, 128 }
 0x40a   :  { %p550_p1 = scmp.ne.s32.totalorder %s709_s5, %s549_s18  ;;  %p553_p2 = scmp.lt.u32.totalorder %s549_s18, %s709_s5 }
 0x40c   :  { %p555_p3 = pnand %p553_p2, %p550_p1 }
 0x40e   :  { %558 = shalt.err (!%p555_p3)
}
 0x40f   :  { %367 = dma.vmem_to_hbm [thread:$0]  %s362_s15, 128, %s709_s5, [#allocation4], %s568_s7, %s568_s7, %s569_s8   ;;  %v445_v62 = vpop.f32.mrb[11].mxu0 }
 0x410   :  { %563 = dma.done.wait [#allocation4], 128  }
 0x411   :  { %564 = vsyncadd [#allocation4], 4294967168 }
 0x412   :  { %565 = dma.done.wait [#allocation9], 128  }
 0x413   :  { %566 = vsyncadd [#allocation9], 4294967168 }
 0x414   :  { %386 = vsyncpa [#allocation3], 1 }
 0x415   :  { %387 = vsyncpa [#allocation6], 1 }
 0x416   :  { %388 = vsyncpa [#allocation4], 1 }
 0x417   :  { %389 = vsyncpa [#allocation9], 1 }

</bundles_post_ra>
